<compile_context>
chip_gen: v7x
topology: tpu7x:2x2x1
jax: 0.10.0
libtpu: 0.0.40
codegen_flags: <defaults>
</compile_context>

<pallas_src>
import functools
from math import sqrt

import jax
import jax.numpy as jnp
from jax import lax
from jax.experimental import pallas as pl
from jax.experimental.pallas import tpu as pltpu

# ---- atom feature vocab sizes (get_atom_feature_dims from the torch module) ----
ATOM_FEATURE_DIMS = [119, 5, 12, 12, 10, 6, 6, 2, 2]   # sum = 174
NUM_FEATS = len(ATOM_FEATURE_DIMS)

SLAB = 128          # lane-width slab; feature 0 -> slab 0, features 1..8 -> slab 1
V_PAD = 2 * SLAB    # padded concatenated vocab (zero rows contribute nothing)


def _feature_layout(padding):
    """Static slab layout: rows per feature, local offset inside its slab, slab id."""
    rows = tuple(d + (1 if padding else 0) for d in ATOM_FEATURE_DIMS)
    local_off, slab_id = [0], [0]
    off = 0
    for r in rows[1:]:
        local_off.append(off)
        slab_id.append(1)
        off += r
    assert rows[0] <= SLAB and off <= SLAB, "slab layout overflow"
    return rows, tuple(local_off), tuple(slab_id)


def _round_up(a, b):
    return -(-a // b) * b


def _atoms_per_row(emb_dim):
    """p = atoms packed per lane-dense output row (p*emb_dim == 128 when possible)."""
    if emb_dim < SLAB and SLAB % emb_dim == 0:
        return SLAB // emb_dim
    return 1


# --------------------------------------------------------------------------- #
# Kernel
# --------------------------------------------------------------------------- #
def _atom_encoder_kernel(x_ref, tbl_ref, out_ref, *, p, emb_width,
                         local_offsets, slab_ids, pad_shift):
    """
    x_ref:   (TG, p*9)              int32    raw feature indices, p atoms per row
    tbl_ref: (p*V_PAD, 2*emb_width) bf16     block-diagonal hi/lo packed slab table
    out_ref: (TG, emb_width)        float32  p packed atom embeddings per row
    """
    x = x_ref[...]
    tg = x.shape[0]

    iota = lax.broadcasted_iota(jnp.int32, (tg, SLAB), 1)
    # Per-feature slab offsets folded into compile-time shifted-iota constants
    # (shared across the p atom slots) instead of a materialized shifted-index tile.
    shifted_iota = [iota - (local_offsets[f] + pad_shift) for f in range(NUM_FEATS)]

    # Build the multi-hot as p*2 independent 128-lane chunks (each feature only
    # compared against its own slab), lane-concatenate into one (TG, p*256) bf16
    # LHS so a single MXU matmul (K multiple of 256) does all the work.
    # TODO(synk): check the bundle dump for how the column->lane broadcast in the
    # compares lowers (XLU vs VPU); restructure with stride-0 lane reads if it
    # lands on the VPU once the MXU is no longer the binding slot.
    chunks = []
    for j in range(p):              # atom slot within a packed output row
        for s in (0, 1):            # 128-lane slab within that slot
            mask = None
            for f in range(NUM_FEATS):
                if slab_ids[f] != s:
                    continue
                c = j * NUM_FEATS + f
                col = x[:, c:c + 1]                        # (TG, 1)
                hit = shifted_iota[f] == col
                mask = hit if mask is None else (mask | hit)
            chunks.append(mask.astype(jnp.bfloat16))       # one cast per chunk
    onehot = jnp.concatenate(chunks, axis=1)               # (TG, p*256) bf16 (exact)

    # One bf16 matmul against the [hi | lo] table halves, f32 accumulation.
    res = jnp.dot(onehot, tbl_ref[...], preferred_element_type=jnp.float32)
    out_ref[...] = res[:, :emb_width] + res[:, emb_width:]   # f32-faithful hi + lo


# --------------------------------------------------------------------------- #
# Parameters
# --------------------------------------------------------------------------- #
def make_atom_encoder_params(emb_dim, key, padding=False):
    """Xavier-uniform init of each per-feature table placed into the (V_PAD, E)
    slab layout (feature 0 -> rows [0,128); features 1..8 packed in [128,256))."""
    rows, local_off, slab_id = _feature_layout(padding)
    table = jnp.zeros((V_PAD, emb_dim), jnp.float32)
    for f, r in enumerate(rows):
        k = jax.random.fold_in(key, f)
        bound = sqrt(6.0 / (r + emb_dim))
        w = jax.random.uniform(k, (r, emb_dim), jnp.float32, -bound, bound)
        if padding:
            w = w.at[0].set(0.0)      # padding_idx=0 row zeroed (torch.nn.Embedding)
        base = slab_id[f] * SLAB + local_off[f]
        table = table.at[base:base + r].set(w)
    return table


def pack_atom_encoder_table(table):
    """(V_PAD, E) f32 slab table -> (p*V_PAD, 2*p*E) bf16 MXU operand.

    * hi/lo split (hi = bf16(T), lo = bf16(T - hi)); the kernel adds the two dot
      halves in f32 so the output stays f32-faithful with bf16 MXU passes.
    * block-diagonal over p = 128//E shifted copies so p atoms share one
      lane-dense (>=128 wide) output row.
    Done once at parameter-setup time; not in the per-call hot path.
    """
    v, e = table.shape
    assert v == V_PAD
    p = _atoms_per_row(e)
    w = p * e
    hi = table.astype(jnp.bfloat16)
    lo = (table - hi.astype(jnp.float32)).astype(jnp.bfloat16)
    packed = jnp.zeros((p * v, 2 * w), jnp.bfloat16)
    for j in range(p):
        packed = packed.at[j * v:(j + 1) * v, j * e:(j + 1) * e].set(hi)
        packed = packed.at[j * v:(j + 1) * v, w + j * e:w + (j + 1) * e].set(lo)
    return packed


# --------------------------------------------------------------------------- #
# Forward
# --------------------------------------------------------------------------- #
def _pick_tile_g(g, p, tile_atoms=None):
    """Atom-groups per grid step: ~1024 atoms/step, >=2 grid steps when the
    problem is big enough (both v7x TensorCores get work on the 'parallel'
    axis), and a multiple of 8 sublanes (or the full extent for tiny inputs)."""
    if tile_atoms is not None:
        t = max(1, tile_atoms // p)
    else:
        t = max(8, 1024 // p)
        if g > 8:
            t = min(t, _round_up(-(-g // 2), 8))
    if t >= g:
        return g
    return max(8, (t // 8) * 8)


@functools.partial(jax.jit, static_argnames=("padding", "tile_atoms"))
def atom_encoder_forward(x, packed_table, *, padding=False, tile_atoms=None):
    """
    x:            (N, 9) integer raw atom feature indices (as in the torch forward)
    packed_table: (p*V_PAD, 2*p*E) bf16 table from pack_atom_encoder_table
    returns       (N, E) float32 == sum over the 9 per-feature embeddings
    """
    n, f = x.shape
    assert f == NUM_FEATS
    pv, two_w = packed_table.shape
    assert pv % V_PAD == 0 and two_w % 2 == 0
    p = pv // V_PAD
    w = two_w // 2
    assert w % p == 0
    emb_dim = w // p

    _, local_off, slab_id = _feature_layout(padding)
    pad_shift = 1 if padding else 0

    x = x.astype(jnp.int32)
    # Group p atoms per kernel row (lane-dense output). Only up to p-1 pad rows;
    # the tile dimension itself uses a ragged grid (no tile padding, no big slice).
    g = -(-n // p)
    pad_rows = g * p - n
    if pad_rows:
        x = jnp.concatenate([x, jnp.zeros((pad_rows, f), jnp.int32)], axis=0)
    xg = x.reshape(g, p * f)

    tile_g = _pick_tile_g(g, p, tile_atoms)
    grid = (pl.cdiv(g, tile_g),)

    kernel = functools.partial(
        _atom_encoder_kernel, p=p, emb_width=w,
        local_offsets=local_off, slab_ids=slab_id, pad_shift=pad_shift)

    cost = pl.CostEstimate(
        flops=2 * g * (p * V_PAD) * (2 * w),
        transcendentals=0,
        bytes_accessed=g * p * f * 4 + pv * two_w * 2 + g * w * 4,
    )

    # NOTE: the resident table could be single-buffered (pipeline_mode=pl.Buffered(1))
    # to drop its second VMEM buffer; left default-buffered here for portability.
    # TODO(synk): the (tile_g, p*9) int32 index block is lane-padded to 128 in VMEM;
    # a transposed layout + XLU transpose would shrink it, but its traffic is tiny.
    out = pl.pallas_call(
        kernel,
        out_shape=jax.ShapeDtypeStruct((g, w), jnp.float32),
        grid_spec=pltpu.PrefetchScalarGridSpec(
            num_scalar_prefetch=0,
            grid=grid,
            in_specs=[
                pl.BlockSpec((tile_g, p * f), lambda i: (i, 0)),    # packed index tile
                pl.BlockSpec((pv, two_w), lambda i: (0, 0)),        # full table resident
            ],
            out_specs=pl.BlockSpec((tile_g, w), lambda i: (i, 0)),  # lane-dense output
        ),
        compiler_params=pltpu.CompilerParams(
            dimension_semantics=("parallel",)),
        cost_estimate=cost,
    )(xg, packed_table)

    out = out.reshape(g * p, emb_dim)        # free row-major reshape (same bytes)
    return out[:n] if pad_rows else out


# --------------------------------------------------------------------------- #
# Reference & self-test
# --------------------------------------------------------------------------- #
def _reference(x, table, padding=False):
    """Pure-JAX reference: 9 gathers from the canonical (V_PAD, E) f32 slab table."""
    _, local_off, slab_id = _feature_layout(padding)
    pad_shift = 1 if padding else 0
    base = jnp.array([slab_id[f] * SLAB + local_off[f] + pad_shift
                      for f in range(NUM_FEATS)], jnp.int32)
    idx = x.astype(jnp.int32) + base[None, :]
    return jnp.sum(table[idx], axis=1)                 # (N, 9, E) -> (N, E)


if __name__ == "__main__":
    emb_dim = 32
    key = jax.random.PRNGKey(0)

    # canonical (slab-packed) f32 parameters + MXU-packed bf16 hi/lo table
    table = make_atom_encoder_params(emb_dim, key, padding=False)   # (256, 32) f32
    packed = pack_atom_encoder_table(table)                         # (1024, 256) bf16

    for n_atoms in (23, 300):   # exercises the p-grouping pad path and the ragged grid
        kx = jax.random.fold_in(key, n_atoms)
        cols = []
        for i, dim in enumerate(ATOM_FEATURE_DIMS):
            kc = jax.random.fold_in(kx, i)
            cols.append(jax.random.randint(kc, (n_atoms, 1), 0, dim, dtype=jnp.int32))
        x = jnp.concatenate(cols, axis=1)              # (N, 9) int32 valid indices

        out = atom_encoder_forward(x, packed, padding=False)
        out = jax.block_until_ready(out)
        ref = _reference(x, table, padding=False)

        assert out.shape == (n_atoms, emb_dim)
        err = float(jnp.max(jnp.abs(out - ref)))
        assert err < 1e-4, f"max abs err {err} at n={n_atoms}"

    print("KERNEL_OK")
</pallas_src>

<mosaic_0001>
module attributes {stable_mosaic.version = 11 : i64} {
  func.func @_atom_encoder_kernel(%arg0: i32, %arg1: memref<6x36xi32, #tpu.memory_space<vmem>>, %arg2: memref<1024x256xbf16, #tpu.memory_space<vmem>>, %arg3: memref<6x128xf32, #tpu.memory_space<vmem>>) attributes {dimension_semantics = [#tpu.dimension_semantics<parallel>], iteration_bounds = array<i64: 1>, scalar_prefetch = 0 : i64, scratch_operands = 0 : i64, tpu.core_type = #tpu.core_type<tc>, window_params = [{transform_indices = @transform_0, window_bounds = array<i64: 6, 36>}, {pipeline_mode = #tpu.pipeline_mode<synchronous>, transform_indices = @transform_1, window_bounds = array<i64: 1024, 256>}, {transform_indices = @transform_2, window_bounds = array<i64: 6, 128>}]} {
    %c0 = arith.constant 0 : index
    %c0_0 = arith.constant 0 : index
    %0 = vector.load %arg1[%c0, %c0_0] : memref<6x36xi32, #tpu.memory_space<vmem>>, vector<6x36xi32>
    %1 = tpu.iota {dimensions = array<i32: 1>} : vector<6x128xi32>
    %c0_i32 = arith.constant 0 : i32
    %2 = vector.broadcast %c0_i32 : i32 to vector<6x128xi32>
    %3 = arith.subi %1, %2 : vector<6x128xi32>
    %c0_i32_1 = arith.constant 0 : i32
    %4 = vector.broadcast %c0_i32_1 : i32 to vector<6x128xi32>
    %5 = arith.subi %1, %4 : vector<6x128xi32>
    %c5_i32 = arith.constant 5 : i32
    %6 = vector.broadcast %c5_i32 : i32 to vector<6x128xi32>
    %7 = arith.subi %1, %6 : vector<6x128xi32>
    %c17_i32 = arith.constant 17 : i32
    %8 = vector.broadcast %c17_i32 : i32 to vector<6x128xi32>
    %9 = arith.subi %1, %8 : vector<6x128xi32>
    %c29_i32 = arith.constant 29 : i32
    %10 = vector.broadcast %c29_i32 : i32 to vector<6x128xi32>
    %11 = arith.subi %1, %10 : vector<6x128xi32>
    %c39_i32 = arith.constant 39 : i32
    %12 = vector.broadcast %c39_i32 : i32 to vector<6x128xi32>
    %13 = arith.subi %1, %12 : vector<6x128xi32>
    %c45_i32 = arith.constant 45 : i32
    %14 = vector.broadcast %c45_i32 : i32 to vector<6x128xi32>
    %15 = arith.subi %1, %14 : vector<6x128xi32>
    %c51_i32 = arith.constant 51 : i32
    %16 = vector.broadcast %c51_i32 : i32 to vector<6x128xi32>
    %17 = arith.subi %1, %16 : vector<6x128xi32>
    %c53_i32 = arith.constant 53 : i32
    %18 = vector.broadcast %c53_i32 : i32 to vector<6x128xi32>
    %19 = arith.subi %1, %18 : vector<6x128xi32>
    %20 = vector.extract_strided_slice %0 {offsets = [0, 0], sizes = [6, 1], strides = [1, 1]} : vector<6x36xi32> to vector<6x1xi32>
    %21 = vector.broadcast %20 : vector<6x1xi32> to vector<6x128xi32>
    %22 = arith.cmpi eq, %3, %21 : vector<6x128xi32>
    %23 = arith.extui %22 : vector<6x128xi1> to vector<6x128xi32>
    %24 = arith.sitofp %23 : vector<6x128xi32> to vector<6x128xf32>
    %25 = arith.truncf %24 : vector<6x128xf32> to vector<6x128xbf16>
    %26 = vector.extract_strided_slice %0 {offsets = [0, 1], sizes = [6, 1], strides = [1, 1]} : vector<6x36xi32> to vector<6x1xi32>
    %27 = vector.broadcast %26 : vector<6x1xi32> to vector<6x128xi32>
    %28 = arith.cmpi eq, %5, %27 : vector<6x128xi32>
    %29 = vector.extract_strided_slice %0 {offsets = [0, 2], sizes = [6, 1], strides = [1, 1]} : vector<6x36xi32> to vector<6x1xi32>
    %30 = vector.broadcast %29 : vector<6x1xi32> to vector<6x128xi32>
    %31 = arith.cmpi eq, %7, %30 : vector<6x128xi32>
    %32 = arith.ori %28, %31 : vector<6x128xi1>
    %33 = vector.extract_strided_slice %0 {offsets = [0, 3], sizes = [6, 1], strides = [1, 1]} : vector<6x36xi32> to vector<6x1xi32>
    %34 = vector.broadcast %33 : vector<6x1xi32> to vector<6x128xi32>
    %35 = arith.cmpi eq, %9, %34 : vector<6x128xi32>
    %36 = arith.ori %32, %35 : vector<6x128xi1>
    %37 = vector.extract_strided_slice %0 {offsets = [0, 4], sizes = [6, 1], strides = [1, 1]} : vector<6x36xi32> to vector<6x1xi32>
    %38 = vector.broadcast %37 : vector<6x1xi32> to vector<6x128xi32>
    %39 = arith.cmpi eq, %11, %38 : vector<6x128xi32>
    %40 = arith.ori %36, %39 : vector<6x128xi1>
    %41 = vector.extract_strided_slice %0 {offsets = [0, 5], sizes = [6, 1], strides = [1, 1]} : vector<6x36xi32> to vector<6x1xi32>
    %42 = vector.broadcast %41 : vector<6x1xi32> to vector<6x128xi32>
    %43 = arith.cmpi eq, %13, %42 : vector<6x128xi32>
    %44 = arith.ori %40, %43 : vector<6x128xi1>
    %45 = vector.extract_strided_slice %0 {offsets = [0, 6], sizes = [6, 1], strides = [1, 1]} : vector<6x36xi32> to vector<6x1xi32>
    %46 = vector.broadcast %45 : vector<6x1xi32> to vector<6x128xi32>
    %47 = arith.cmpi eq, %15, %46 : vector<6x128xi32>
    %48 = arith.ori %44, %47 : vector<6x128xi1>
    %49 = vector.extract_strided_slice %0 {offsets = [0, 7], sizes = [6, 1], strides = [1, 1]} : vector<6x36xi32> to vector<6x1xi32>
    %50 = vector.broadcast %49 : vector<6x1xi32> to vector<6x128xi32>
    %51 = arith.cmpi eq, %17, %50 : vector<6x128xi32>
    %52 = arith.ori %48, %51 : vector<6x128xi1>
    %53 = vector.extract_strided_slice %0 {offsets = [0, 8], sizes = [6, 1], strides = [1, 1]} : vector<6x36xi32> to vector<6x1xi32>
    %54 = vector.broadcast %53 : vector<6x1xi32> to vector<6x128xi32>
    %55 = arith.cmpi eq, %19, %54 : vector<6x128xi32>
    %56 = arith.ori %52, %55 : vector<6x128xi1>
    %57 = arith.extui %56 : vector<6x128xi1> to vector<6x128xi32>
    %58 = arith.sitofp %57 : vector<6x128xi32> to vector<6x128xf32>
    %59 = arith.truncf %58 : vector<6x128xf32> to vector<6x128xbf16>
    %60 = vector.extract_strided_slice %0 {offsets = [0, 9], sizes = [6, 1], strides = [1, 1]} : vector<6x36xi32> to vector<6x1xi32>
    %61 = vector.broadcast %60 : vector<6x1xi32> to vector<6x128xi32>
    %62 = arith.cmpi eq, %3, %61 : vector<6x128xi32>
    %63 = arith.extui %62 : vector<6x128xi1> to vector<6x128xi32>
    %64 = arith.sitofp %63 : vector<6x128xi32> to vector<6x128xf32>
    %65 = arith.truncf %64 : vector<6x128xf32> to vector<6x128xbf16>
    %66 = vector.extract_strided_slice %0 {offsets = [0, 10], sizes = [6, 1], strides = [1, 1]} : vector<6x36xi32> to vector<6x1xi32>
    %67 = vector.broadcast %66 : vector<6x1xi32> to vector<6x128xi32>
    %68 = arith.cmpi eq, %5, %67 : vector<6x128xi32>
    %69 = vector.extract_strided_slice %0 {offsets = [0, 11], sizes = [6, 1], strides = [1, 1]} : vector<6x36xi32> to vector<6x1xi32>
    %70 = vector.broadcast %69 : vector<6x1xi32> to vector<6x128xi32>
    %71 = arith.cmpi eq, %7, %70 : vector<6x128xi32>
    %72 = arith.ori %68, %71 : vector<6x128xi1>
    %73 = vector.extract_strided_slice %0 {offsets = [0, 12], sizes = [6, 1], strides = [1, 1]} : vector<6x36xi32> to vector<6x1xi32>
    %74 = vector.broadcast %73 : vector<6x1xi32> to vector<6x128xi32>
    %75 = arith.cmpi eq, %9, %74 : vector<6x128xi32>
    %76 = arith.ori %72, %75 : vector<6x128xi1>
    %77 = vector.extract_strided_slice %0 {offsets = [0, 13], sizes = [6, 1], strides = [1, 1]} : vector<6x36xi32> to vector<6x1xi32>
    %78 = vector.broadcast %77 : vector<6x1xi32> to vector<6x128xi32>
    %79 = arith.cmpi eq, %11, %78 : vector<6x128xi32>
    %80 = arith.ori %76, %79 : vector<6x128xi1>
    %81 = vector.extract_strided_slice %0 {offsets = [0, 14], sizes = [6, 1], strides = [1, 1]} : vector<6x36xi32> to vector<6x1xi32>
    %82 = vector.broadcast %81 : vector<6x1xi32> to vector<6x128xi32>
    %83 = arith.cmpi eq, %13, %82 : vector<6x128xi32>
    %84 = arith.ori %80, %83 : vector<6x128xi1>
    %85 = vector.extract_strided_slice %0 {offsets = [0, 15], sizes = [6, 1], strides = [1, 1]} : vector<6x36xi32> to vector<6x1xi32>
    %86 = vector.broadcast %85 : vector<6x1xi32> to vector<6x128xi32>
    %87 = arith.cmpi eq, %15, %86 : vector<6x128xi32>
    %88 = arith.ori %84, %87 : vector<6x128xi1>
    %89 = vector.extract_strided_slice %0 {offsets = [0, 16], sizes = [6, 1], strides = [1, 1]} : vector<6x36xi32> to vector<6x1xi32>
    %90 = vector.broadcast %89 : vector<6x1xi32> to vector<6x128xi32>
    %91 = arith.cmpi eq, %17, %90 : vector<6x128xi32>
    %92 = arith.ori %88, %91 : vector<6x128xi1>
    %93 = vector.extract_strided_slice %0 {offsets = [0, 17], sizes = [6, 1], strides = [1, 1]} : vector<6x36xi32> to vector<6x1xi32>
    %94 = vector.broadcast %93 : vector<6x1xi32> to vector<6x128xi32>
    %95 = arith.cmpi eq, %19, %94 : vector<6x128xi32>
    %96 = arith.ori %92, %95 : vector<6x128xi1>
    %97 = arith.extui %96 : vector<6x128xi1> to vector<6x128xi32>
    %98 = arith.sitofp %97 : vector<6x128xi32> to vector<6x128xf32>
    %99 = arith.truncf %98 : vector<6x128xf32> to vector<6x128xbf16>
    %100 = vector.extract_strided_slice %0 {offsets = [0, 18], sizes = [6, 1], strides = [1, 1]} : vector<6x36xi32> to vector<6x1xi32>
    %101 = vector.broadcast %100 : vector<6x1xi32> to vector<6x128xi32>
    %102 = arith.cmpi eq, %3, %101 : vector<6x128xi32>
    %103 = arith.extui %102 : vector<6x128xi1> to vector<6x128xi32>
    %104 = arith.sitofp %103 : vector<6x128xi32> to vector<6x128xf32>
    %105 = arith.truncf %104 : vector<6x128xf32> to vector<6x128xbf16>
    %106 = vector.extract_strided_slice %0 {offsets = [0, 19], sizes = [6, 1], strides = [1, 1]} : vector<6x36xi32> to vector<6x1xi32>
    %107 = vector.broadcast %106 : vector<6x1xi32> to vector<6x128xi32>
    %108 = arith.cmpi eq, %5, %107 : vector<6x128xi32>
    %109 = vector.extract_strided_slice %0 {offsets = [0, 20], sizes = [6, 1], strides = [1, 1]} : vector<6x36xi32> to vector<6x1xi32>
    %110 = vector.broadcast %109 : vector<6x1xi32> to vector<6x128xi32>
    %111 = arith.cmpi eq, %7, %110 : vector<6x128xi32>
    %112 = arith.ori %108, %111 : vector<6x128xi1>
    %113 = vector.extract_strided_slice %0 {offsets = [0, 21], sizes = [6, 1], strides = [1, 1]} : vector<6x36xi32> to vector<6x1xi32>
    %114 = vector.broadcast %113 : vector<6x1xi32> to vector<6x128xi32>
    %115 = arith.cmpi eq, %9, %114 : vector<6x128xi32>
    %116 = arith.ori %112, %115 : vector<6x128xi1>
    %117 = vector.extract_strided_slice %0 {offsets = [0, 22], sizes = [6, 1], strides = [1, 1]} : vector<6x36xi32> to vector<6x1xi32>
    %118 = vector.broadcast %117 : vector<6x1xi32> to vector<6x128xi32>
    %119 = arith.cmpi eq, %11, %118 : vector<6x128xi32>
    %120 = arith.ori %116, %119 : vector<6x128xi1>
    %121 = vector.extract_strided_slice %0 {offsets = [0, 23], sizes = [6, 1], strides = [1, 1]} : vector<6x36xi32> to vector<6x1xi32>
    %122 = vector.broadcast %121 : vector<6x1xi32> to vector<6x128xi32>
    %123 = arith.cmpi eq, %13, %122 : vector<6x128xi32>
    %124 = arith.ori %120, %123 : vector<6x128xi1>
    %125 = vector.extract_strided_slice %0 {offsets = [0, 24], sizes = [6, 1], strides = [1, 1]} : vector<6x36xi32> to vector<6x1xi32>
    %126 = vector.broadcast %125 : vector<6x1xi32> to vector<6x128xi32>
    %127 = arith.cmpi eq, %15, %126 : vector<6x128xi32>
    %128 = arith.ori %124, %127 : vector<6x128xi1>
    %129 = vector.extract_strided_slice %0 {offsets = [0, 25], sizes = [6, 1], strides = [1, 1]} : vector<6x36xi32> to vector<6x1xi32>
    %130 = vector.broadcast %129 : vector<6x1xi32> to vector<6x128xi32>
    %131 = arith.cmpi eq, %17, %130 : vector<6x128xi32>
    %132 = arith.ori %128, %131 : vector<6x128xi1>
    %133 = vector.extract_strided_slice %0 {offsets = [0, 26], sizes = [6, 1], strides = [1, 1]} : vector<6x36xi32> to vector<6x1xi32>
    %134 = vector.broadcast %133 : vector<6x1xi32> to vector<6x128xi32>
    %135 = arith.cmpi eq, %19, %134 : vector<6x128xi32>
    %136 = arith.ori %132, %135 : vector<6x128xi1>
    %137 = arith.extui %136 : vector<6x128xi1> to vector<6x128xi32>
    %138 = arith.sitofp %137 : vector<6x128xi32> to vector<6x128xf32>
    %139 = arith.truncf %138 : vector<6x128xf32> to vector<6x128xbf16>
    %140 = vector.extract_strided_slice %0 {offsets = [0, 27], sizes = [6, 1], strides = [1, 1]} : vector<6x36xi32> to vector<6x1xi32>
    %141 = vector.broadcast %140 : vector<6x1xi32> to vector<6x128xi32>
    %142 = arith.cmpi eq, %3, %141 : vector<6x128xi32>
    %143 = arith.extui %142 : vector<6x128xi1> to vector<6x128xi32>
    %144 = arith.sitofp %143 : vector<6x128xi32> to vector<6x128xf32>
    %145 = arith.truncf %144 : vector<6x128xf32> to vector<6x128xbf16>
    %146 = vector.extract_strided_slice %0 {offsets = [0, 28], sizes = [6, 1], strides = [1, 1]} : vector<6x36xi32> to vector<6x1xi32>
    %147 = vector.broadcast %146 : vector<6x1xi32> to vector<6x128xi32>
    %148 = arith.cmpi eq, %5, %147 : vector<6x128xi32>
    %149 = vector.extract_strided_slice %0 {offsets = [0, 29], sizes = [6, 1], strides = [1, 1]} : vector<6x36xi32> to vector<6x1xi32>
    %150 = vector.broadcast %149 : vector<6x1xi32> to vector<6x128xi32>
    %151 = arith.cmpi eq, %7, %150 : vector<6x128xi32>
    %152 = arith.ori %148, %151 : vector<6x128xi1>
    %153 = vector.extract_strided_slice %0 {offsets = [0, 30], sizes = [6, 1], strides = [1, 1]} : vector<6x36xi32> to vector<6x1xi32>
    %154 = vector.broadcast %153 : vector<6x1xi32> to vector<6x128xi32>
    %155 = arith.cmpi eq, %9, %154 : vector<6x128xi32>
    %156 = arith.ori %152, %155 : vector<6x128xi1>
    %157 = vector.extract_strided_slice %0 {offsets = [0, 31], sizes = [6, 1], strides = [1, 1]} : vector<6x36xi32> to vector<6x1xi32>
    %158 = vector.broadcast %157 : vector<6x1xi32> to vector<6x128xi32>
    %159 = arith.cmpi eq, %11, %158 : vector<6x128xi32>
    %160 = arith.ori %156, %159 : vector<6x128xi1>
    %161 = vector.extract_strided_slice %0 {offsets = [0, 32], sizes = [6, 1], strides = [1, 1]} : vector<6x36xi32> to vector<6x1xi32>
    %162 = vector.broadcast %161 : vector<6x1xi32> to vector<6x128xi32>
    %163 = arith.cmpi eq, %13, %162 : vector<6x128xi32>
    %164 = arith.ori %160, %163 : vector<6x128xi1>
    %165 = vector.extract_strided_slice %0 {offsets = [0, 33], sizes = [6, 1], strides = [1, 1]} : vector<6x36xi32> to vector<6x1xi32>
    %166 = vector.broadcast %165 : vector<6x1xi32> to vector<6x128xi32>
    %167 = arith.cmpi eq, %15, %166 : vector<6x128xi32>
    %168 = arith.ori %164, %167 : vector<6x128xi1>
    %169 = vector.extract_strided_slice %0 {offsets = [0, 34], sizes = [6, 1], strides = [1, 1]} : vector<6x36xi32> to vector<6x1xi32>
    %170 = vector.broadcast %169 : vector<6x1xi32> to vector<6x128xi32>
    %171 = arith.cmpi eq, %17, %170 : vector<6x128xi32>
    %172 = arith.ori %168, %171 : vector<6x128xi1>
    %173 = vector.extract_strided_slice %0 {offsets = [0, 35], sizes = [6, 1], strides = [1, 1]} : vector<6x36xi32> to vector<6x1xi32>
    %174 = vector.broadcast %173 : vector<6x1xi32> to vector<6x128xi32>
    %175 = arith.cmpi eq, %19, %174 : vector<6x128xi32>
    %176 = arith.ori %172, %175 : vector<6x128xi1>
    %177 = arith.extui %176 : vector<6x128xi1> to vector<6x128xi32>
    %178 = arith.sitofp %177 : vector<6x128xi32> to vector<6x128xf32>
    %179 = arith.truncf %178 : vector<6x128xf32> to vector<6x128xbf16>
    %180 = tpu.concatenate %25, %59, %65, %99, %105, %139, %145, %179 in 1 : vector<6x128xbf16>, vector<6x128xbf16>, vector<6x128xbf16>, vector<6x128xbf16>, vector<6x128xbf16>, vector<6x128xbf16>, vector<6x128xbf16>, vector<6x128xbf16> -> vector<6x1024xbf16>
    %c0_2 = arith.constant 0 : index
    %c0_3 = arith.constant 0 : index
    %181 = vector.load %arg2[%c0_2, %c0_3] : memref<1024x256xbf16, #tpu.memory_space<vmem>>, vector<1024x256xbf16>
    %cst = arith.constant dense<0.000000e+00> : vector<6x256xf32>
    %182 = tpu.matmul %180, %181, %cst {dimension_numbers = #tpu.dot_dimension_numbers<[1], [0], [0], [1], [0, 0, 1, 1], [], []>} : vector<6x1024xbf16>, vector<1024x256xbf16>, vector<6x256xf32> -> vector<6x256xf32>
    %183 = vector.extract_strided_slice %182 {offsets = [0, 0], sizes = [6, 128], strides = [1, 1]} : vector<6x256xf32> to vector<6x128xf32>
    %184 = vector.extract_strided_slice %182 {offsets = [0, 128], sizes = [6, 128], strides = [1, 1]} : vector<6x256xf32> to vector<6x128xf32>
    %185 = arith.addf %183, %184 : vector<6x128xf32>
    %c0_4 = arith.constant 0 : index
    %c0_5 = arith.constant 0 : index
    %186 = vector.load %arg3[%c0_4, %c0_5] : memref<6x128xf32, #tpu.memory_space<vmem>>, vector<6x128xf32>
    tpu.vector_store %arg3[%c0_4, %c0_5], %185 {strides = array<i32>} : memref<6x128xf32, #tpu.memory_space<vmem>>, vector<6x128xf32>,
    return
  }
  func.func @transform_0(%arg0: i32) -> (i32, i32) {
    %c0_i32 = arith.constant 0 : i32
    %c0_i32_0 = arith.constant 0 : i32
    return %arg0, %c0_i32 : i32, i32
  }
  func.func @transform_1(%arg0: i32) -> (i32, i32) {
    %c0_i32 = arith.constant 0 : i32
    %c0_i32_0 = arith.constant 0 : i32
    %c0_i32_1 = arith.constant 0 : i32
    return %c0_i32, %c0_i32_0 : i32, i32
  }
  func.func @transform_2(%arg0: i32) -> (i32, i32) {
    %c0_i32 = arith.constant 0 : i32
    %c0_i32_0 = arith.constant 0 : i32
    return %arg0, %c0_i32 : i32, i32
  }
}

</mosaic_0001>

<bundles_post_ra>
// kernel: atom_encoder_forward.1
= control target key start
LH: loop header
LB: loop body
LE: loop exit
PB: predicated region body
PF: predicated region fallthrough
CT: control target
= control target key end

     0   :  { %7 = vsyncpa [#allocation3], 0  ;;  %s1625_s9 = smov [#allocation2]   ;;  %s1819_s0 = inlined_call_operand.vmem [shape: s32[6,36], index: 0, kind: input, shape index: {}]   ;;  %s1820_s1 = inlined_call_operand.hbm [shape: bf16[1024,256], index: 1, kind: input, shape index: {}]   ;;  %s1821_s2 = inlined_call_operand.vmem [shape: f32[6,128], index: 2, kind: output, shape index: {}]  }
   0x1   :  { %s15_s10 = sshll.u32 %s1625_s9, 4  ;;  %s1601_s13 = scalar_lea.hbm %s1820_s1, 16384  ;;  %s16_s10 = int_to_ptr.vmem [resolvable:$true] %s15_s10 }
   0x2   :  { %p1602_p0 = scmp.ne.s32.totalorder %s1820_s1, %s1601_s13  ;;  %p1605_p1 = scmp.lt.u32.totalorder %s1601_s13, %s1820_s1 }
   0x4   :  { %p1607_p2 = pnand %p1605_p1, %p1602_p0 }
   0x6   :  { %1610 = shalt.err (!%p1607_p2)
}
   0x7   :  { %s1611_s18 = scalar_lea.vmem %s16_s10, 16384  ;;  %p1616_p4 = scmp.lt.s32.totalorder %s16_s10, %s16_s10 }
   0x8   :  { %p1612_p3 = scmp.ne.s32.totalorder %s16_s10, %s1611_s18  ;;  %p1617_p5 = scmp.lt.s32.totalorder %s1611_s18, %s1611_s18 }
   0xa   :  { %p1618_p6 = por %p1617_p5, %p1616_p4 }
   0xc   :  { %p1619_p7 = pnand %p1618_p6, %p1612_p3 }
   0xe   :  { %1622 = shalt.err (!%p1619_p7)
}
   0xf   :  { %s1626_s19 = smov 128   ;;  %s1627_s20 = smov 8  }
  0x10   :  { %21 = dma.hbm_to_vmem [thread:$0]  %s1820_s1, 16384, %s16_s10, [#allocation3], %s1626_s19, %s1626_s19, %s1627_s20  }
  0x11   :  { %1623 = dma.done.wait [#allocation3], 16384  }
  0x12   :  { %1624 = vsyncadd [#allocation3], 4294950912  ;;  %v1628_v0 = vmov 19   ;;  %v1629_v1 = vmov 1   ;;  %v1696_v2 = vld [vmem:[%s1819_s0] sm:$0x3f] }
  0x13   :  { %1374 = vset.pattern.permute.xlu1 %v1628_v0  ;;  %1372 = vset.pattern.permute.xlu0 %v1629_v1  ;;  %v1409_v3 = vld [vmem:[#allocation2 + $0x204] ss:$8 sps:$4 sm:$0xff]   ;;  %v1413_v5 = vld [vmem:[#allocation2 + $0x200] ss:$8 sps:$4 sm:$0xff]   ;;  %v1415_v7 = vld [vmem:[#allocation2 + $0x214] ss:$8 sps:$4 sm:$0xff]  }
  0x14   :  { %141 = vperm.xlu1 %1374, %v1696_v2   ;;  %43 = vperm.xlu0 %1372, %v1696_v2   ;;  %v1411_v4 = vld [vmem:[#allocation2 + $0x4] ss:$8 sps:$4 sm:$0xff]   ;;  %v1414_v6 = vld [vmem:[#allocation2] ss:$8 sps:$4 sm:$0xff]   ;;  %v1630_v8 = vmov 20   ;;  %v1631_v9 = vmov 2  }
  0x15   :  { %1081 = vmatprep.subr.bf16.mxu0 %v1409_v3  ;;  %v1417_v10 = vld [vmem:[#allocation2 + $0x14] ss:$8 sps:$4 sm:$0xff]   ;;  %999 = vmatprep.subr.bf16.mxu1 %v1411_v4  ;;  %v1419_v11 = vld [vmem:[#allocation2 + $0x210] ss:$8 sps:$4 sm:$0xff]   ;;  %v1421_v13 = vld [vmem:[#allocation2 + $0x224] ss:$8 sps:$4 sm:$0xff]  }
  0x16   :  { %1082 = vmatpush1.bf16.msra.mxu0 %v1413_v5  ;;  %1000 = vmatpush1.bf16.msra.mxu1 %v1414_v6  ;;  %v1420_v12 = vld [vmem:[#allocation2 + $0x10] ss:$8 sps:$4 sm:$0xff]   ;;  %v1423_v14 = vld [vmem:[#allocation2 + $0x24] ss:$8 sps:$4 sm:$0xff]   ;;  %v1632_v15 = vmov 3   ;;  %v1633_v16 = vmov 21  }
  0x17   :  { %1083 = vmatprep.subr.bf16.mxu0 %v1415_v7  ;;  %1001 = vmatprep.subr.bf16.mxu1 %v1417_v10  ;;  %v1425_v17 = vld [vmem:[#allocation2 + $0x220] ss:$8 sps:$4 sm:$0xff]   ;;  %v1427_v19 = vld [vmem:[#allocation2 + $0x234] ss:$8 sps:$4 sm:$0xff]   ;;  %v1634_v21 = vmov 4   ;;  %v1635_v22 = vmov 5  }
  0x18   :  { %1375 = vset.pattern.permute.xlu1 %v1630_v8  ;;  %1373 = vset.pattern.permute.xlu0 %v1631_v9  ;;  %v1426_v18 = vld [vmem:[#allocation2 + $0x20] ss:$8 sps:$4 sm:$0xff]   ;;  %v1429_v20 = vld [vmem:[#allocation2 + $0x34] ss:$8 sps:$4 sm:$0xff]   ;;  %v1431_v23 = vld [vmem:[#allocation2 + $0x230] ss:$8 sps:$4 sm:$0xff]  }
  0x19   :  { %145 = vperm.xlu1 %1375, %v1696_v2   ;;  %47 = vperm.xlu0 %1373, %v1696_v2   ;;  %v1432_v24 = vld [vmem:[#allocation2 + $0x30] ss:$8 sps:$4 sm:$0xff]   ;;  %v1433_v25 = vld [vmem:[#allocation2 + $0x244] ss:$8 sps:$4 sm:$0xff]   ;;  %v1636_v27 = vmov 22   ;;  %v1637_v28 = vmov 24  }
  0x1a   :  { %1084 = vmatpush1.bf16.msra.mxu0 %v1419_v11  ;;  %1002 = vmatpush1.bf16.msra.mxu1 %v1420_v12  ;;  %v1435_v26 = vld [vmem:[#allocation2 + $0x44] ss:$8 sps:$4 sm:$0xff]   ;;  %v1437_v29 = vld [vmem:[#allocation2 + $0x240] ss:$8 sps:$4 sm:$0xff]   ;;  %v1439_v31 = vld [vmem:[#allocation2 + $0x254] ss:$8 sps:$4 sm:$0xff]  }
  0x1b   :  { %1085 = vmatprep.subr.bf16.mxu0 %v1421_v13  ;;  %1003 = vmatprep.subr.bf16.mxu1 %v1423_v14  ;;  %v1438_v30 = vld [vmem:[#allocation2 + $0x40] ss:$8 sps:$4 sm:$0xff]   ;;  %v1441_v32 = vld [vmem:[#allocation2 + $0x54] ss:$8 sps:$4 sm:$0xff]   ;;  %v1638_v33 = vmov 23   ;;  %v1639_v34 = vmov 8  }
  0x1c   :  { %v1443_v35 = vld [vmem:[#allocation2 + $0x250] ss:$8 sps:$4 sm:$0xff]   ;;  %v1445_v37 = vld [vmem:[#allocation2 + $0x264] ss:$8 sps:$4 sm:$0xff]   ;;  %v1640_v39 = vmov 6   ;;  %v1641_v40 = vmov 18  }
  0x1d   :  { %1376 = vset.pattern.permute.xlu1 %v1632_v15  ;;  %1377 = vset.pattern.permute.xlu0 %v1633_v16  ;;  %v1444_v36 = vld [vmem:[#allocation2 + $0x50] ss:$8 sps:$4 sm:$0xff]   ;;  %v1447_v38 = vld [vmem:[#allocation2 + $0x64] ss:$8 sps:$4 sm:$0xff]   ;;  %v1449_v41 = vld [vmem:[#allocation2 + $0x260] ss:$8 sps:$4 sm:$0xff]  }
  0x1e   :  { %52 = vperm.xlu1 %1376, %v1696_v2   ;;  %150 = vperm.xlu0 %1377, %v1696_v2   ;;  %v1450_v42 = vld [vmem:[#allocation2 + $0x60] ss:$8 sps:$4 sm:$0xff]   ;;  %v1451_v43 = vld [vmem:[#allocation2 + $0x274] ss:$8 sps:$4 sm:$0xff]   ;;  %v1642_v45 = vmov 7   ;;  %v1643_v46 = vmov 28  }
  0x1f   :  { %1086 = vmatpush1.bf16.msra.mxu0 %v1425_v17  ;;  %1004 = vmatpush1.bf16.msra.mxu1 %v1426_v18  ;;  %v1453_v44 = vld [vmem:[#allocation2 + $0x74] ss:$8 sps:$4 sm:$0xff]   ;;  %v1455_v47 = vld [vmem:[#allocation2 + $0x270] ss:$8 sps:$4 sm:$0xff]   ;;  %v1457_v49 = vld [vmem:[#allocation2 + $0x284] ss:$8 sps:$4 sm:$0xff]  }
  0x20   :  { %1087 = vmatprep.subr.bf16.mxu0 %v1427_v19  ;;  %1005 = vmatprep.subr.bf16.mxu1 %v1429_v20  ;;  %v1456_v48 = vld [vmem:[#allocation2 + $0x70] ss:$8 sps:$4 sm:$0xff]   ;;  %v1459_v50 = vld [vmem:[#allocation2 + $0x84] ss:$8 sps:$4 sm:$0xff]   ;;  %v1644_v51 = vmov 25   ;;  %v1645_v52 = vmov 30  }
  0x21   :  { %v1461_v53 = vld [vmem:[#allocation2 + $0x280] ss:$8 sps:$4 sm:$0xff]   ;;  %v1463_v55 = vld [vmem:[#allocation2 + $0x294] ss:$8 sps:$4 sm:$0xff]   ;;  %v1646_v57 = vmov 26   ;;  %v1647_v58 = vmov 14  }
  0x22   :  { %1378 = vset.pattern.permute.xlu1 %v1634_v21  ;;  %1380 = vset.pattern.permute.xlu0 %v1635_v22  ;;  %v1462_v54 = vld [vmem:[#allocation2 + $0x80] ss:$8 sps:$4 sm:$0xff]   ;;  %v1465_v56 = vld [vmem:[#allocation2 + $0x94] ss:$8 sps:$4 sm:$0xff]   ;;  %v1467_v59 = vld [vmem:[#allocation2 + $0x290] ss:$8 sps:$4 sm:$0xff]  }
  0x23   :  { %57 = vperm.xlu1 %1378, %v1696_v2   ;;  %62 = vperm.xlu0 %1380, %v1696_v2   ;;  %v1468_v60 = vld [vmem:[#allocation2 + $0x90] ss:$8 sps:$4 sm:$0xff]   ;;  %v1469_v61 = vld [vmem:[#allocation2 + $0x2a4] ss:$8 sps:$4 sm:$0xff]   ;;  %v1648_v63 = vmov 0   ;;  %v1649_v0 = vmov 33  }
  0x24   :  { %1088 = vmatpush1.bf16.msra.mxu0 %v1431_v23  ;;  %1006 = vmatpush1.bf16.msra.mxu1 %v1432_v24  ;;  %v1471_v62 = vld [vmem:[#allocation2 + $0xa4] ss:$8 sps:$4 sm:$0xff]   ;;  %v1473_v1 = vld [vmem:[#allocation2 + $0x2a0] ss:$8 sps:$4 sm:$0xff]   ;;  %v1475_v4 = vld [vmem:[#allocation2 + $0x2b4] ss:$8 sps:$4 sm:$0xff]  }
  0x25   :  { %1089 = vmatprep.subr.bf16.mxu0 %v1433_v25  ;;  %1007 = vmatprep.subr.bf16.mxu1 %v1435_v26  ;;  %v1474_v3 = vld [vmem:[#allocation2 + $0xa0] ss:$8 sps:$4 sm:$0xff]   ;;  %v1477_v5 = vld [vmem:[#allocation2 + $0xb4] ss:$8 sps:$4 sm:$0xff]   ;;  %v1650_v6 = vmov 10   ;;  %v1651_v7 = vmov 17  }
  0x26   :  { %v1479_v8 = vld [vmem:[#allocation2 + $0x2b0] ss:$8 sps:$4 sm:$0xff]   ;;  %v1481_v10 = vld [vmem:[#allocation2 + $0x2c4] ss:$8 sps:$4 sm:$0xff]   ;;  %v1652_v12 = vmov 11   ;;  %v1653_v13 = vmov 27  }
  0x27   :  { %1379 = vset.pattern.permute.xlu1 %v1636_v27  ;;  %1383 = vset.pattern.permute.xlu0 %v1637_v28  ;;  %v1480_v9 = vld [vmem:[#allocation2 + $0xb0] ss:$8 sps:$4 sm:$0xff]   ;;  %v1483_v11 = vld [vmem:[#allocation2 + $0xc4] ss:$8 sps:$4 sm:$0xff]   ;;  %v1485_v14 = vld [vmem:[#allocation2 + $0x2c0] ss:$8 sps:$4 sm:$0xff]  }
  0x28   :  { %155 = vperm.xlu1 %1379, %v1696_v2   ;;  %165 = vperm.xlu0 %1383, %v1696_v2   ;;  %v1486_v15 = vld [vmem:[#allocation2 + $0xc0] ss:$8 sps:$4 sm:$0xff]   ;;  %v1487_v16 = vld [vmem:[#allocation2 + $0x2d4] ss:$8 sps:$4 sm:$0xff]   ;;  %v1654_v18 = vmov 29   ;;  %v1655_v19 = vmov 35  }
  0x29   :  { %1090 = vmatpush1.bf16.msra.mxu0 %v1437_v29  ;;  %1008 = vmatpush1.bf16.msra.mxu1 %v1438_v30  ;;  %v1489_v17 = vld [vmem:[#allocation2 + $0xd4] ss:$8 sps:$4 sm:$0xff]   ;;  %v1491_v20 = vld [vmem:[#allocation2 + $0x2d0] ss:$8 sps:$4 sm:$0xff]   ;;  %v1493_v22 = vld [vmem:[#allocation2 + $0x2e4] ss:$8 sps:$4 sm:$0xff]  }
  0x2a   :  { %1091 = vmatprep.subr.bf16.mxu0 %v1439_v31  ;;  %1009 = vmatprep.subr.bf16.mxu1 %v1441_v32  ;;  %v1492_v21 = vld [vmem:[#allocation2 + $0xd0] ss:$8 sps:$4 sm:$0xff]   ;;  %v1495_v23 = vld [vmem:[#allocation2 + $0xe4] ss:$8 sps:$4 sm:$0xff]   ;;  %v1656_v24 = vmov 12   ;;  %v1657_v30 = vmov 13  }
  0x2b   :  { %v1497_v25 = vld [vmem:[#allocation2 + $0x2e0] ss:$8 sps:$4 sm:$0xff]   ;;  %v1499_v27 = vld [vmem:[#allocation2 + $0x2f4] ss:$8 sps:$4 sm:$0xff]   ;;  %v1503_v29 = vld [vmem:[#allocation2 + $0x2f0] ss:$8 sps:$4 sm:$0xff]  }
  0x2c   :  { %1381 = vset.pattern.permute.xlu1 %v1638_v33  ;;  %1386 = vset.pattern.permute.xlu0 %v1639_v34  ;;  %v1498_v26 = vld [vmem:[#allocation2 + $0xe0] ss:$8 sps:$4 sm:$0xff]   ;;  %v1501_v28 = vld [vmem:[#allocation2 + $0xf4] ss:$8 sps:$4 sm:$0xff]   ;;  %v1504_v31 = vld [vmem:[#allocation2 + $0xf0] ss:$8 sps:$4 sm:$0xff]  }
  0x2d   :  { %160 = vperm.xlu1 %1381, %v1696_v2   ;;  %77 = vperm.xlu0 %1386, %v1696_v2   ;;  %v1507_v32 = vld [vmem:[#allocation2 + $0x304] ss:$8 sps:$4 sm:$0xff]   ;;  %v1658_v34 = vmov 31  }
  0x2e   :  { %1092 = vmatpush1.bf16.msra.mxu0 %v1443_v35  ;;  %1010 = vmatpush1.bf16.msra.mxu1 %v1444_v36  ;;  %v1510_v33 = vld [vmem:[#allocation2 + $0x104] ss:$8 sps:$4 sm:$0xff]   ;;  %v1659_v35 = vmov 32   ;;  %v1660_v36 = vmov 15  }
  0x2f   :  { %1093 = vmatprep.subr.bf16.mxu0 %v1445_v37  ;;  %1011 = vmatprep.subr.bf16.mxu1 %v1447_v38  ;;  %v1661_v37 = vmov 16   ;;  %v1662_v38 = vmov 34  }
  0x31   :  { %1382 = vset.pattern.permute.xlu1 %v1640_v39  ;;  %1389 = vset.pattern.permute.xlu0 %v1641_v40  ;;  %v1663_v39 = vmov 9  }
  0x32   :  { %67 = vperm.xlu1 %1382, %v1696_v2   ;;  %134 = vperm.xlu0 %1389, %v1696_v2  }
  0x33   :  { %1094 = vmatpush1.bf16.msra.mxu0 %v1449_v41  ;;  %1012 = vmatpush1.bf16.msra.mxu1 %v1450_v42 }
  0x34   :  { %1095 = vmatprep.subr.bf16.mxu0 %v1451_v43  ;;  %1013 = vmatprep.subr.bf16.mxu1 %v1453_v44 }
  0x36   :  { %1384 = vset.pattern.permute.xlu1 %v1642_v45  ;;  %1392 = vset.pattern.permute.xlu0 %v1643_v46  ;;  %v26_v46 = vlaneseq }
  0x37   :  { %72 = vperm.xlu1 %1384, %v1696_v2   ;;  %190 = vperm.xlu0 %1392, %v1696_v2  }
  0x38   :  { %1096 = vmatpush1.bf16.msra.mxu0 %v1455_v47  ;;  %1014 = vmatpush1.bf16.msra.mxu1 %v1456_v48 }
  0x39   :  { %1097 = vmatprep.subr.bf16.mxu0 %v1457_v49  ;;  %1015 = vmatprep.subr.bf16.mxu1 %v1459_v50  ;;  %v1734_v49 = vand.u32 127, %v26_v46  ;;  %v1550_v46 = vld [vmem:[#allocation2 + $0x170] ss:$8 sps:$4 sm:$0xff]  }
  0x3b   :  { %1385 = vset.pattern.permute.xlu1 %v1644_v51  ;;  %1395 = vset.pattern.permute.xlu0 %v1645_v52  ;;  %v1737_v50 = vadd.s32 4294967291, %v1734_v49  ;;  %v1740_v51 = vadd.s32 4294967279, %v1734_v49 }
  0x3c   :  { %170 = vperm.xlu1 %1385, %v1696_v2   ;;  %199 = vperm.xlu0 %1395, %v1696_v2  }
  0x3d   :  { %1098 = vmatpush1.bf16.msra.mxu0 %v1461_v53  ;;  %1016 = vmatpush1.bf16.msra.mxu1 %v1462_v54  ;;  %v1749_v54 = vadd.s32 4294967257, %v1734_v49 }
  0x3e   :  { %1099 = vmatprep.subr.bf16.mxu0 %v1463_v55  ;;  %1017 = vmatprep.subr.bf16.mxu1 %v1465_v56 }
  0x40   :  { %1387 = vset.pattern.permute.xlu1 %v1646_v57  ;;  %1398 = vset.pattern.permute.xlu0 %v1647_v58  ;;  %v1753_v57 = vadd.s32 4294967251, %v1734_v49  ;;  %v1756_v58 = vadd.s32 4294967243, %v1734_v49 }
  0x41   :  { %175 = vperm.xlu1 %1387, %v1696_v2   ;;  %111 = vperm.xlu0 %1398, %v1696_v2  }
  0x42   :  { %1100 = vmatpush1.bf16.msra.mxu0 %v1467_v59  ;;  %1018 = vmatpush1.bf16.msra.mxu1 %v1468_v60  ;;  %v1760_v59 = vadd.s32 4294967245, %v1734_v49 }
  0x43   :  { %1101 = vmatprep.subr.bf16.mxu0 %v1469_v61  ;;  %1019 = vmatprep.subr.bf16.mxu1 %v1471_v62  ;;  %v1664_v62 = vmov 0.0  }
  0x45   :  { %1388 = vset.pattern.permute.xlu1 %v1648_v63  ;;  %1401 = vset.pattern.permute.xlu0 %v1649_v0 }
  0x46   :  { %36 = vperm.xlu1 %1388, %v1696_v2   ;;  %214 = vperm.xlu0 %1401, %v1696_v2  }
  0x47   :  { %1102 = vmatpush1.bf16.msra.mxu0 %v1473_v1  ;;  %1020 = vmatpush1.bf16.msra.mxu1 %v1474_v3 }
  0x48   :  { %1103 = vmatprep.subr.bf16.mxu0 %v1475_v4  ;;  %1021 = vmatprep.subr.bf16.mxu1 %v1477_v5 }
  0x4a   :  { %1390 = vset.pattern.permute.xlu1 %v1650_v6  ;;  %1404 = vset.pattern.permute.xlu0 %v1651_v7  ;;  %v1505_v7 = vld [vmem:[#allocation2 + $0x300] ss:$8 sps:$4 sm:$0xff]  }
  0x4b   :  { %92 = vperm.xlu1 %1390, %v1696_v2   ;;  %126 = vperm.xlu0 %1404, %v1696_v2  }
  0x4c   :  { %1104 = vmatpush1.bf16.msra.mxu0 %v1479_v8  ;;  %1022 = vmatpush1.bf16.msra.mxu1 %v1480_v9  ;;  %v1508_v9 = vld [vmem:[#allocation2 + $0x100] ss:$8 sps:$4 sm:$0xff]  }
  0x4d   :  { %1105 = vmatprep.subr.bf16.mxu0 %v1481_v10  ;;  %1023 = vmatprep.subr.bf16.mxu1 %v1483_v11  ;;  %v1513_v10 = vld [vmem:[#allocation2 + $0x314] ss:$8 sps:$4 sm:$0xff]  }
  0x4e   :  { %v1516_v11 = vld [vmem:[#allocation2 + $0x114] ss:$8 sps:$4 sm:$0xff]  }
  0x4f   :  { %1391 = vset.pattern.permute.xlu1 %v1652_v12  ;;  %1407 = vset.pattern.permute.xlu0 %v1653_v13  ;;  %v1665_v12 = vmov 1.0|1.0   ;;  %v1511_v13 = vld [vmem:[#allocation2 + $0x310] ss:$8 sps:$4 sm:$0xff]  }
  0x50   :  { %96 = vperm.xlu1 %1391, %v1696_v2   ;;  %183 = vperm.xlu0 %1407, %v1696_v2  }
  0x51   :  { %1106 = vmatpush1.bf16.msra.mxu0 %v1485_v14  ;;  %1024 = vmatpush1.bf16.msra.mxu1 %v1486_v15  ;;  %v1514_v14 = vld [vmem:[#allocation2 + $0x110] ss:$8 sps:$4 sm:$0xff]   ;;  %v1519_v15 = vld [vmem:[#allocation2 + $0x324] ss:$8 sps:$4 sm:$0xff]  }
  0x52   :  { %1107 = vmatprep.subr.bf16.mxu0 %v1487_v16  ;;  %1025 = vmatprep.subr.bf16.mxu1 %v1489_v17  ;;  %v1522_v17 = vld [vmem:[#allocation2 + $0x124] ss:$8 sps:$4 sm:$0xff]  }
  0x54   :  { %1393 = vset.pattern.permute.xlu1 %v1654_v18  ;;  %1408 = vset.pattern.permute.xlu0 %v1655_v19 }
  0x55   :  { %194 = vperm.xlu1 %1393, %v1696_v2   ;;  %1108 = vmatpush1.bf16.msra.mxu0 %v1491_v20  ;;  %v1520_v20 = vld [vmem:[#allocation2 + $0x120] ss:$8 sps:$4 sm:$0xff]  }
  0x56   :  { %1026 = vmatpush1.bf16.msra.mxu1 %v1492_v21  ;;  %1109 = vmatprep.subr.bf16.mxu0 %v1493_v22  ;;  %v1525_v21 = vld [vmem:[#allocation2 + $0x334] ss:$8 sps:$4 sm:$0xff]  }
  0x57   :  { %1027 = vmatprep.subr.bf16.mxu1 %v1495_v23  ;;  %v1528_v22 = vld [vmem:[#allocation2 + $0x134] ss:$8 sps:$4 sm:$0xff]  }
  0x59   :  { %1394 = vset.pattern.permute.xlu1 %v1656_v24  ;;  %1110 = vmatpush1.bf16.msra.mxu0 %v1497_v25  ;;  %v1523_v24 = vld [vmem:[#allocation2 + $0x330] ss:$8 sps:$4 sm:$0xff]  }
  0x5a   :  { %101 = vperm.xlu1 %1394, %v1696_v2   ;;  %1028 = vmatpush1.bf16.msra.mxu1 %v1498_v26  ;;  %v1526_v25 = vld [vmem:[#allocation2 + $0x130] ss:$8 sps:$4 sm:$0xff]   ;;  %v1531_v26 = vld [vmem:[#allocation2 + $0x344] ss:$8 sps:$4 sm:$0xff]  }
  0x5b   :  { %1111 = vmatprep.subr.bf16.mxu0 %v1499_v27  ;;  %1029 = vmatprep.subr.bf16.mxu1 %v1501_v28  ;;  %v1534_v28 = vld [vmem:[#allocation2 + $0x144] ss:$8 sps:$4 sm:$0xff]  }
  0x5d   :  { %1112 = vmatpush1.bf16.msra.mxu0 %v1503_v29 }
  0x5e   :  { %1396 = vset.pattern.permute.xlu1 %v1657_v30  ;;  %1030 = vmatpush1.bf16.msra.mxu1 %v1504_v31  ;;  %v1529_v30 = vld [vmem:[#allocation2 + $0x340] ss:$8 sps:$4 sm:$0xff]  }
  0x5f   :  { %106 = vperm.xlu1 %1396, %v1696_v2   ;;  %1122 = vmatprep.subr.bf16.mxu0 %v1507_v32  ;;  %v1532_v31 = vld [vmem:[#allocation2 + $0x140] ss:$8 sps:$4 sm:$0xff]   ;;  %v1537_v32 = vld [vmem:[#allocation2 + $0x354] ss:$8 sps:$4 sm:$0xff]  }
  0x60   :  { %1040 = vmatprep.subr.bf16.mxu1 %v1510_v33  ;;  %v1540_v33 = vld [vmem:[#allocation2 + $0x154] ss:$8 sps:$4 sm:$0xff]  }
  0x63   :  { %1397 = vset.pattern.permute.xlu1 %v1658_v34 }
  0x64   :  { %204 = vperm.xlu1 %1397, %v1696_v2  }
  0x68   :  { %1399 = vset.pattern.permute.xlu1 %v1659_v35  ;;  %v1535_v35 = vld [vmem:[#allocation2 + $0x350] ss:$8 sps:$4 sm:$0xff]  }
  0x69   :  { %209 = vperm.xlu1 %1399, %v1696_v2  }
  0x6d   :  { %1400 = vset.pattern.permute.xlu1 %v1660_v36 }
  0x6e   :  { %116 = vperm.xlu1 %1400, %v1696_v2  }
  0x72   :  { %1402 = vset.pattern.permute.xlu1 %v1661_v37  ;;  %v1538_v37 = vld [vmem:[#allocation2 + $0x150] ss:$8 sps:$4 sm:$0xff]  }
  0x73   :  { %121 = vperm.xlu1 %1402, %v1696_v2  }
  0x77   :  { %1403 = vset.pattern.permute.xlu1 %v1662_v38  ;;  %v1543_v38 = vld [vmem:[#allocation2 + $0x364] ss:$8 sps:$4 sm:$0xff]  }
  0x78   :  { %219 = vperm.xlu1 %1403, %v1696_v2  }
  0x7c   :  { %1405 = vset.pattern.permute.xlu1 %v1655_v19  ;;  %v1517_v19 = vld [vmem:[#allocation2 + $0x320] ss:$8 sps:$4 sm:$0xff]  }
  0x7d   :  { %224 = vperm.xlu1 %1405, %v1696_v2  }
  0x81   :  { %1406 = vset.pattern.permute.xlu1 %v1663_v39  ;;  %v1546_v39 = vld [vmem:[#allocation2 + $0x164] ss:$8 sps:$4 sm:$0xff]  }
  0x82   :  { %85 = vperm.xlu1 %1406, %v1696_v2   ;;  %v1745_v2 = vadd.s32 4294967267, %v1734_v49 }
  0x93   :  { %v142_v40 = vpop.permute.xlu1 %141  ;;  %v44_v42 = vpop.permute.xlu0 %43 }
  0x94   :  { %vm45_vm0 = vcmp.eq.s32.totalorder %v1734_v49, %v44_v42  ;;  %v1549_v42 = vld [vmem:[#allocation2 + $0x374] ss:$8 sps:$4 sm:$0xff]  }
  0x98   :  { %v146_v41 = vpop.permute.xlu1 %145  ;;  %v48_v44 = vpop.permute.xlu0 %47 }
  0x99   :  { %vm49_vm1 = vcmp.eq.s32.totalorder %v1737_v50, %v48_v44  ;;  %vm147_vm11 = vcmp.eq.s32.totalorder %v1737_v50, %v146_v41  ;;  %v1544_v41 = vld [vmem:[#allocation2 + $0x160] ss:$8 sps:$4 sm:$0xff]   ;;  %v1552_v44 = vld [vmem:[#allocation2 + $0x174] ss:$8 sps:$4 sm:$0xff]  }
  0x9a   :  { %vm50_vm2 = vmor %vm45_vm0, %vm49_vm1  ;;  %vm143_vm0 = vcmp.eq.s32.totalorder %v1734_v49, %v142_v40  ;;  %v1541_v40 = vld [vmem:[#allocation2 + $0x360] ss:$8 sps:$4 sm:$0xff]  }
  0x9d   :  { %v53_v43 = vpop.permute.xlu1 %52  ;;  %v151_v47 = vpop.permute.xlu0 %150 }
  0x9e   :  { %vm54_vm3 = vcmp.eq.s32.totalorder %v1740_v51, %v53_v43  ;;  %vm152_vm14 = vcmp.eq.s32.totalorder %v1740_v51, %v151_v47  ;;  %v1555_v47 = vld [vmem:[#allocation2 + $0x384] ss:$8 sps:$4 sm:$0xff]  }
  0x9f   :  { %vm55_vm5 = vmor %vm50_vm2, %vm54_vm3 }
  0xa0   :  { %vm148_vm3 = vmor %vm143_vm0, %vm147_vm11 }
  0xa2   :  { %v58_v45 = vpop.permute.xlu1 %57  ;;  %v63_v52 = vpop.permute.xlu0 %62 }
  0xa3   :  { %vm59_vm4 = vcmp.eq.s32.totalorder %v1745_v2, %v58_v45  ;;  %vm64_vm7 = vcmp.eq.s32.totalorder %v1749_v54, %v63_v52  ;;  %v1547_v45 = vld [vmem:[#allocation2 + $0x370] ss:$8 sps:$4 sm:$0xff]  }
  0xa4   :  { %vm60_vm6 = vmor %vm55_vm5, %vm59_vm4 }
  0xa5   :  { %vm65_vm9 = vmor %vm60_vm6, %vm64_vm7 }
  0xa6   :  { %vm153_vm5 = vmor %vm148_vm3, %vm152_vm14 }
  0xa7   :  { %v156_v48 = vpop.permute.xlu1 %155  ;;  %v166_v55 = vpop.permute.xlu0 %165 }
  0xa8   :  { %vm157_vm1 = vcmp.eq.s32.totalorder %v1745_v2, %v156_v48  ;;  %v1558_v48 = vld [vmem:[#allocation2 + $0x184] ss:$8 sps:$4 sm:$0xff]  }
  0xa9   :  { %vm158_vm6 = vmor %vm153_vm5, %vm157_vm1 }
  0xac   :  { %v161_v53 = vpop.permute.xlu1 %160  ;;  %v78_v60 = vpop.permute.xlu0 %77 }
  0xad   :  { %vm79_vm10 = vcmp.eq.s32.totalorder %v1756_v58, %v78_v60  ;;  %vm162_vm4 = vcmp.eq.s32.totalorder %v1749_v54, %v161_v53  ;;  %v1553_v53 = vld [vmem:[#allocation2 + $0x380] ss:$8 sps:$4 sm:$0xff]   ;;  %v1564_v60 = vld [vmem:[#allocation2 + $0x194] ss:$8 sps:$4 sm:$0xff]  }
  0xae   :  { %vm163_vm7 = vmor %vm158_vm6, %vm162_vm4 }
  0xb1   :  { %v68_v56 = vpop.permute.xlu1 %67  ;;  %v135_v3 = vpop.permute.xlu0 %134 }
  0xb2   :  { %vm69_vm8 = vcmp.eq.s32.totalorder %v1753_v57, %v68_v56  ;;  %v1561_v56 = vld [vmem:[#allocation2 + $0x394] ss:$8 sps:$4 sm:$0xff]  }
  0xb3   :  { %vm70_vm12 = vmor %vm65_vm9, %vm69_vm8  ;;  %vm167_vm8 = vcmp.eq.s32.totalorder %v1753_v57, %v166_v55  ;;  %v1556_v55 = vld [vmem:[#allocation2 + $0x180] ss:$8 sps:$4 sm:$0xff]  }
  0xb6   :  { %v73_v61 = vpop.permute.xlu1 %72  ;;  %v191_v18 = vpop.permute.xlu0 %190 }
  0xb7   :  { %vm74_vm13 = vcmp.eq.s32.totalorder %v1760_v59, %v73_v61 }
  0xb8   :  { %vm75_vm15 = vmor %vm70_vm12, %vm74_vm13  ;;  %vm136_vm13 = vcmp.eq.s32.totalorder %v1734_v49, %v135_v3  ;;  %v1567_v3 = vld [vmem:[#allocation2 + $0x3a4] ss:$8 sps:$4 sm:$0xff]  }
  0xb9   :  { %vm80_vm2 = vmor %vm75_vm15, %vm79_vm10 }
  0xba   :  { %v1178_v63 = vsel %vm80_vm2, 1.0, %v1664_v62  ;;  %vm168_vm12 = vmor %vm163_vm7, %vm167_vm8  ;;  %vm192_vm2 = vcmp.eq.s32.totalorder %v1734_v49, %v191_v18 }
  0xbb   :  { %v171_v0 = vpop.permute.xlu1 %170  ;;  %v83_v1 = vpack.c.bf16 %v1178_v63, %v1178_v63  ;;  %vm1317_vm14 = vmpackc.low %vm136_vm13, %vm136_vm13  ;;  %v200_v27 = vpop.permute.xlu0 %199 }
  0xbc   :  { %vm172_vm9 = vcmp.eq.s32.totalorder %v1760_v59, %v171_v0  ;;  %vm201_vm3 = vcmp.eq.s32.totalorder %v1740_v51, %v200_v27  ;;  %v1559_v0 = vld [vmem:[#allocation2 + $0x390] ss:$8 sps:$4 sm:$0xff]   ;;  %v1592_v27 = vld [vmem:[#allocation2 + $0x1e0] ss:$8 sps:$4 sm:$0xff]  }
  0xbd   :  { %1031 = vmatprep.mubr.bf16.mxu1 %v83_v1  ;;  %vm173_vm10 = vmor %vm168_vm12, %vm172_vm9  ;;  %v1562_v1 = vld [vmem:[#allocation2 + $0x190] ss:$8 sps:$4 sm:$0xff]  }
  0xc0   :  { %v176_v4 = vpop.permute.xlu1 %175  ;;  %v112_v61 = vpop.permute.xlu0 %111 }
  0xc1   :  { %vm177_vm11 = vcmp.eq.s32.totalorder %v1756_v58, %v176_v4  ;;  %v1570_v4 = vld [vmem:[#allocation2 + $0x1a4] ss:$8 sps:$4 sm:$0xff]  }
  0xc2   :  { %vm178_vm15 = vmor %vm173_vm10, %vm177_vm11 }
  0xc3   :  { %v1182_v5 = vsel %vm178_vm15, 1.0, %v1664_v62  ;;  %vm113_vm15 = vcmp.eq.s32.totalorder %v1749_v54, %v112_v61 }
  0xc4   :  { %v181_v6 = vpack.c.bf16 %v1182_v5, %v1182_v5 }
  0xc5   :  { %v37_v8 = vpop.permute.xlu1 %36  ;;  %v215_v5 = vpop.permute.xlu0 %214 }
  0xc6   :  { %vm38_vm0 = vcmp.eq.s32.totalorder %v1734_v49, %v37_v8  ;;  %1113 = vmatprep.mubr.bf16.mxu0 %v181_v6  ;;  %v1565_v6 = vld [vmem:[#allocation2 + $0x3a0] ss:$8 sps:$4 sm:$0xff]  }
  0xc7   :  { %vm1313_vm1 = vmpackc.low %vm38_vm0, %vm38_vm0  ;;  %1318 = vmatmul.mubr.msk.bf16.vlgmr.msra.gmra.mrb[0].mxu0 %vm1317_vm14, %v1665_v12  ;;  %v1568_v8 = vld [vmem:[#allocation2 + $0x1a0] ss:$8 sps:$4 sm:$0xff]  }
  0xc8   :  { %1123 = vmatpush1.bf16.msra.mxu0 %v1505_v7  ;;  %1314 = vmatmul.mubr.msk.bf16.vlgmr.msra.gmra.mrb[0].mxu1 %vm1313_vm1, %v1665_v12 }
  0xc9   :  { %1041 = vmatpush1.bf16.msra.mxu1 %v1508_v9  ;;  %1124 = vmatprep.subr.bf16.mxu0 %v1513_v10  ;;  %v1573_v9 = vld [vmem:[#allocation2 + $0x3b4] ss:$8 sps:$4 sm:$0xff]   ;;  %v1571_v10 = vld [vmem:[#allocation2 + $0x3b0] ss:$8 sps:$4 sm:$0xff]  }
  0xca   :  { %v1779_v16 = vpop.permute.xlu1 %92  ;;  %1042 = vmatprep.subr.bf16.mxu1 %v1516_v11  ;;  %v1574_v11 = vld [vmem:[#allocation2 + $0x1b0] ss:$8 sps:$4 sm:$0xff]  }
  0xcb   :  { %vm94_vm9 = vcmp.eq.s32.totalorder %v1734_v49, %v1779_v16  ;;  %v1577_v16 = vld [vmem:[#allocation2 + $0x3c0] ss:$8 sps:$4 sm:$0xff]  }
  0xcc   :  { %1125 = vmatpush1.bf16.msra.mxu0 %v1511_v13  ;;  %v1579_v13 = vld [vmem:[#allocation2 + $0x3c4] ss:$8 sps:$4 sm:$0xff]  }
  0xcd   :  { %1043 = vmatpush1.bf16.msra.mxu1 %v1514_v14  ;;  %1126 = vmatprep.subr.bf16.mxu0 %v1519_v15  ;;  %v1582_v15 = vld [vmem:[#allocation2 + $0x1c4] ss:$8 sps:$4 sm:$0xff]  }
  0xce   :  { %1044 = vmatprep.subr.bf16.mxu1 %v1522_v17  ;;  %v1580_v17 = vld [vmem:[#allocation2 + $0x1c0] ss:$8 sps:$4 sm:$0xff]  }
  0xcf   :  { %v1781_v23 = vpop.permute.xlu1 %96 }
  0xd0   :  { %1127 = vmatpush1.bf16.msra.mxu0 %v1517_v19  ;;  %vm98_vm7 = vcmp.eq.s32.totalorder %v1737_v50, %v1781_v23  ;;  %v1585_v19 = vld [vmem:[#allocation2 + $0x3d4] ss:$8 sps:$4 sm:$0xff]   ;;  %v1583_v23 = vld [vmem:[#allocation2 + $0x3d0] ss:$8 sps:$4 sm:$0xff]  }
  0xd1   :  { %1045 = vmatpush1.bf16.msra.mxu1 %v1520_v20  ;;  %1128 = vmatprep.subr.bf16.mxu0 %v1525_v21  ;;  %vm99_vm10 = vmor %vm94_vm9, %vm98_vm7  ;;  %v1588_v20 = vld [vmem:[#allocation2 + $0x1d4] ss:$8 sps:$4 sm:$0xff]  }
  0xd2   :  { %1046 = vmatprep.subr.bf16.mxu1 %v1528_v22 }
  0xd4   :  { %1129 = vmatpush1.bf16.msra.mxu0 %v1523_v24  ;;  %v195_v29 = vpop.permute.xlu1 %194  ;;  %v1591_v24 = vld [vmem:[#allocation2 + $0x3e4] ss:$8 sps:$4 sm:$0xff]  }
  0xd5   :  { %1047 = vmatpush1.bf16.msra.mxu1 %v1526_v25  ;;  %vm196_vm4 = vcmp.eq.s32.totalorder %v1737_v50, %v195_v29  ;;  %1130 = vmatprep.subr.bf16.mxu0 %v1531_v26  ;;  %v1576_v50 = vld [vmem:[#allocation2 + $0x1b4] ss:$8 sps:$4 sm:$0xff]   ;;  %v1589_v26 = vld [vmem:[#allocation2 + $0x3e0] ss:$8 sps:$4 sm:$0xff]  }
  0xd6   :  { %vm197_vm5 = vmor %vm192_vm2, %vm196_vm4  ;;  %1048 = vmatprep.subr.bf16.mxu1 %v1534_v28  ;;  %v1600_v28 = vld [vmem:[#allocation2 + $0x1f4] ss:$8 sps:$4 sm:$0xff]  }
  0xd7   :  { %vm1786_vm6 = vmor %vm197_vm5, %vm201_vm3 }
  0xd8   :  { %1131 = vmatpush1.bf16.msra.mxu0 %v1529_v30 }
  0xd9   :  { %1049 = vmatpush1.bf16.msra.mxu1 %v1532_v31  ;;  %v102_v36 = vpop.permute.xlu1 %101  ;;  %1132 = vmatprep.subr.bf16.mxu0 %v1537_v32  ;;  %v1595_v31 = vld [vmem:[#allocation2 + $0x3f0] ss:$8 sps:$4 sm:$0xff]  }
  0xda   :  { %1050 = vmatprep.subr.bf16.mxu1 %v1540_v33  ;;  %vm103_vm8 = vcmp.eq.s32.totalorder %v1740_v51, %v102_v36  ;;  %v127_v51 = vpop.permute.xlu0 %126  ;;  %v1598_v32 = vld [vmem:[#allocation2 + $0x1f0] ss:$8 sps:$4 sm:$0xff]  }
  0xdb   :  { %vm104_vm11 = vmor %vm99_vm10, %vm103_vm8  ;;  %vm128_vm1 = vcmp.eq.s32.totalorder %v1756_v58, %v127_v51  ;;  %vm216_vm10 = vcmp.eq.s32.totalorder %v1753_v57, %v215_v5 }
  0xdc   :  { %1133 = vmatpush1.bf16.msra.mxu0 %v1535_v35 }
  0xdd   :  { %1051 = vmatpush1.bf16.msra.mxu1 %v1538_v37  ;;  %1134 = vmatprep.subr.bf16.mxu0 %v1543_v38 }
  0xde   :  { %v107_v43 = vpop.permute.xlu1 %106  ;;  %1052 = vmatprep.subr.bf16.mxu1 %v1546_v39  ;;  %v184_v29 = vpop.permute.xlu0 %183 }
  0xdf   :  { %vm108_vm12 = vcmp.eq.s32.totalorder %v1745_v2, %v107_v43 }
  0xe0   :  { %1135 = vmatpush1.bf16.msra.mxu0 %v1541_v40  ;;  %vm109_vm13 = vmor %vm104_vm11, %vm108_vm12 }
  0xe1   :  { %1053 = vmatpush1.bf16.msra.mxu1 %v1544_v41  ;;  %1136 = vmatprep.subr.bf16.mxu0 %v1549_v42  ;;  %vm114_vm0 = vmor %vm109_vm13, %vm113_vm15 }
  0xe2   :  { %1054 = vmatprep.subr.bf16.mxu1 %v1552_v44 }
  0xe3   :  { %v1790_v52 = vpop.permute.xlu1 %204 }
  0xe4   :  { %1137 = vmatpush1.bf16.msra.mxu0 %v1547_v45  ;;  %vm206_vm5 = vcmp.eq.s32.totalorder %v1745_v2, %v1790_v52  ;;  %v1586_v2 = vld [vmem:[#allocation2 + $0x1d0] ss:$8 sps:$4 sm:$0xff]  }
  0xe5   :  { %1055 = vmatpush1.bf16.msra.mxu1 %v1550_v46  ;;  %1138 = vmatprep.subr.bf16.mxu0 %v1555_v47  ;;  %vm207_vm9 = vmor %vm1786_vm6, %vm206_vm5 }
  0xe6   :  { %1056 = vmatprep.subr.bf16.mxu1 %v1558_v48 }
  0xe8   :  { %1139 = vmatpush1.bf16.msra.mxu0 %v1553_v53  ;;  %v210_v63 = vpop.permute.xlu1 %209 }
  0xe9   :  { %1057 = vmatpush1.bf16.msra.mxu1 %v1556_v55  ;;  %1140 = vmatprep.subr.bf16.mxu0 %v1561_v56  ;;  %vm211_vm8 = vcmp.eq.s32.totalorder %v1749_v54, %v210_v63  ;;  %v1594_v54 = vld [vmem:[#allocation2 + $0x1e4] ss:$8 sps:$4 sm:$0xff]  }
  0xea   :  { %1058 = vmatprep.subr.bf16.mxu1 %v1564_v60  ;;  %vm212_vm12 = vmor %vm207_vm9, %vm211_vm8 }
  0xeb   :  { %vm217_vm13 = vmor %vm212_vm12, %vm216_vm10 }
  0xec   :  { %1141 = vmatpush1.bf16.msra.mxu0 %v1559_v0 }
  0xed   :  { %1059 = vmatpush1.bf16.msra.mxu1 %v1562_v1  ;;  %v117_v7 = vpop.permute.xlu1 %116  ;;  %1142 = vmatprep.subr.bf16.mxu0 %v1567_v3 }
  0xee   :  { %1060 = vmatprep.subr.bf16.mxu1 %v1570_v4  ;;  %vm118_vm14 = vcmp.eq.s32.totalorder %v1753_v57, %v117_v7  ;;  %v1597_v57 = vld [vmem:[#allocation2 + $0x3f4] ss:$8 sps:$4 sm:$0xff]  }
  0xef   :  { %vm119_vm2 = vmor %vm114_vm0, %vm118_vm14  ;;  %vm185_vm0 = vcmp.eq.s32.totalorder %v1734_v49, %v184_v29 }
  0xf0   :  { %1143 = vmatpush1.bf16.msra.mxu0 %v1565_v6 }
  0xf1   :  { %1061 = vmatpush1.bf16.msra.mxu1 %v1568_v8  ;;  %1144 = vmatprep.subr.bf16.mxu0 %v1573_v9 }
  0xf2   :  { %v122_v14 = vpop.permute.xlu1 %121  ;;  %1062 = vmatprep.subr.bf16.mxu1 %v1576_v50 }
  0xf3   :  { %vm123_vm3 = vcmp.eq.s32.totalorder %v1760_v59, %v122_v14 }
  0xf4   :  { %vm124_vm4 = vmor %vm119_vm2, %vm123_vm3  ;;  %1145 = vmatpush1.bf16.msra.mxu0 %v1571_v10 }
  0xf5   :  { %vm129_vm7 = vmor %vm124_vm4, %vm128_vm1  ;;  %1063 = vmatpush1.bf16.msra.mxu1 %v1574_v11  ;;  %1146 = vmatprep.subr.bf16.mxu0 %v1579_v13 }
  0xf6   :  { %v1180_v18 = vsel %vm129_vm7, 1.0, %v1664_v62  ;;  %1064 = vmatprep.subr.bf16.mxu1 %v1582_v15  ;;  %vm1319_vm2 = vmpackc.low %vm185_vm0, %vm185_vm0 }
  0xf7   :  { %v132_v21 = vpack.c.bf16 %v1180_v18, %v1180_v18  ;;  %v220_v22 = vpop.permute.xlu1 %219 }
  0xf8   :  { %1147 = vmatpush1.bf16.msra.mxu0 %v1577_v16  ;;  %vm221_vm11 = vcmp.eq.s32.totalorder %v1760_v59, %v220_v22 }
  0xf9   :  { %1065 = vmatpush1.bf16.msra.mxu1 %v1580_v17  ;;  %1072 = vmatprep.mubr.bf16.mxu1 %v132_v21  ;;  %vm222_vm15 = vmor %vm217_vm13, %vm221_vm11 }
  0xfa   :  { %1148 = vmatprep.subr.bf16.mxu0 %v1585_v19  ;;  %1066 = vmatprep.subr.bf16.mxu1 %v1588_v20 }
  0xfc   :  { %1149 = vmatpush1.bf16.msra.mxu0 %v1583_v23  ;;  %v225_v25 = vpop.permute.xlu1 %224 }
  0xfd   :  { %vm226_vm6 = vcmp.eq.s32.totalorder %v1756_v58, %v225_v25  ;;  %1067 = vmatpush1.bf16.msra.mxu1 %v1586_v2  ;;  %1150 = vmatprep.subr.bf16.mxu0 %v1591_v24 }
  0xfe   :  { %vm227_vm14 = vmor %vm222_vm15, %vm226_vm6  ;;  %1068 = vmatprep.subr.bf16.mxu1 %v1594_v54 }
  0xff   :  { %v1184_v59 = vsel %vm227_vm14, 1.0, %v1664_v62 }
 0x100   :  { %v230_v30 = vpack.c.bf16 %v1184_v59, %v1184_v59  ;;  %1151 = vmatpush1.bf16.msra.mxu0 %v1589_v26 }
 0x101   :  { %1069 = vmatpush1.bf16.msra.mxu1 %v1592_v27  ;;  %1152 = vmatprep.subr.bf16.mxu0 %v1597_v57  ;;  %v86_v33 = vpop.permute.xlu1 %85 }
 0x102   :  { %1154 = vmatprep.mubr.bf16.mxu0 %v230_v30  ;;  %1070 = vmatprep.subr.bf16.mxu1 %v1600_v28  ;;  %vm87_vm1 = vcmp.eq.s32.totalorder %v1734_v49, %v86_v33 }
 0x103   :  { %vm1315_vm3 = vmpackc.low %vm87_vm1, %vm87_vm1 }
 0x104   :  { %1153 = vmatpush1.bf16.msra.mxu0 %v1595_v31 }
 0x105   :  { %1071 = vmatpush1.bf16.msra.mxu1 %v1598_v32 }
 0x107   :  { %1320 = vmatmul.mubr.msk.bf16.vlgmr.msra.gmra.mrb[0].mxu0 %vm1319_vm2, %v1665_v12 }
 0x108   :  { %1316 = vmatmul.mubr.msk.bf16.vlgmr.msra.gmra.mrb[0].mxu1 %vm1315_vm3, %v1665_v12 }
 0x1da   :  { %v1156_v58 = vpop.f32.mrb[0].mxu0 }
 0x1db   :  { %v1074_v62 = vpop.f32.mrb[0].mxu1  ;;  %v1158_v34 = vpop.f32.mrb[1].mxu0 }
 0x1dc   :  { %v1321_v35 = vadd.f32 %v1156_v58, %v1074_v62  ;;  %v1076_v36 = vpop.f32.mrb[1].mxu1  ;;  %v1160_v37 = vpop.f32.mrb[2].mxu0 }
 0x1dd   :  { %v1322_v38 = vadd.f32 %v1158_v34, %v1076_v36  ;;  %v1078_v39 = vpop.f32.mrb[2].mxu1  ;;  %v1161_v40 = vpop.f32.mrb[3].mxu0 }
 0x1de   :  { %v1079_v41 = vpop.f32.mrb[3].mxu1 }
 0x1df   :  { %v1163_v42 = vadd.f32 %v1322_v38, %v1321_v35 }
 0x1e1   :  { %1164 = vst [vmem:[%s1821_s2] sm:$0x3f] %v1163_v42 }
 0x1e2   :  { %1169 = vsyncpa [#allocation3], 1 }

</bundles_post_ra>
